<compile_context>
chip_gen: v7x
topology: tpu7x:2x2x1
jax: 0.10.0
libtpu: 0.0.40
codegen_flags: <defaults>
</compile_context>

<pallas_src>
import functools

import jax
import jax.numpy as jnp
from jax import lax
from jax.experimental import pallas as pl
from jax.experimental.pallas import tpu as pltpu


def _vmem_limit_bytes():
    """Generation-aware scoped-VMEM budget (v5e/v6e 128 MiB phys, v7x 64 MiB)."""
    try:
        cap = getattr(pltpu.get_tpu_info(), "vmem_capacity_bytes", None)
        if cap:
            return int(max(min(cap * 3 // 4, 96 * 1024 * 1024), 32 * 1024 * 1024))
    except Exception:
        pass
    return 32 * 1024 * 1024  # conservative fallback, safe on every generation


def _sublane_align(dtype):
    # f32 -> 8 rows/sublane-tile, bf16 -> 16, int8/fp8 -> 32.
    return 8 * max(1, 4 // jnp.dtype(dtype).itemsize)


def _pick_tile(dim, target, align):
    """Largest tile <= target that divides `dim` and is a multiple of `align`.

    Falls back to the full extent (full-extent blocks are always legal w.r.t.
    the (8, 128) divisibility rule)."""
    if dim <= target:
        return dim
    t = (target // align) * align
    while t >= align:
        if dim % t == 0:
            return t
        t -= align
    return dim


# ----------------------------------------------------------------------------
# Generic tiled / pipelined matmul (used for the output projection)
# ----------------------------------------------------------------------------
def _matmul_kernel(x_ref, w_ref, o_ref, acc_ref):
    @pl.when(pl.program_id(2) == 0)
    def _init():
        acc_ref[...] = jnp.zeros_like(acc_ref)

    acc_ref[...] += jnp.dot(x_ref[...], w_ref[...],
                            preferred_element_type=jnp.float32)

    @pl.when(pl.program_id(2) == pl.num_programs(2) - 1)
    def _finalize():
        o_ref[...] = acc_ref[...].astype(o_ref.dtype)


def _matmul_bias_kernel(x_ref, w_ref, b_ref, o_ref, acc_ref):
    @pl.when(pl.program_id(2) == 0)
    def _init():
        acc_ref[...] = jnp.zeros_like(acc_ref)

    acc_ref[...] += jnp.dot(x_ref[...], w_ref[...],
                            preferred_element_type=jnp.float32)

    @pl.when(pl.program_id(2) == pl.num_programs(2) - 1)
    def _finalize():
        o_ref[...] = (acc_ref[...]
                      + b_ref[...].astype(jnp.float32)).astype(o_ref.dtype)


def tiled_matmul(x2d, w, bias=None, *, tm_target=256, tn_target=1024,
                 tk_target=512):
    """x2d:(M,K) @ w:(K,N) [+ bias:(N,)] with a pipelined (i, j, k) grid."""
    M, K = x2d.shape
    K2, N = w.shape
    assert K == K2

    tm = _pick_tile(M, tm_target, _sublane_align(x2d.dtype))
    tn = _pick_tile(N, tn_target, 128)   # wide output tiles -> x read few times
    tk = _pick_tile(K, tk_target, 128)
    grid = (M // tm, N // tn, K // tk)

    x_spec = pl.BlockSpec((tm, tk), lambda i, j, k: (i, k))
    w_spec = pl.BlockSpec((tk, tn), lambda i, j, k: (k, j))
    o_spec = pl.BlockSpec((tm, tn), lambda i, j, k: (i, j))

    itemsize = x2d.dtype.itemsize
    cost = pl.CostEstimate(
        flops=2 * M * N * K,
        transcendentals=0,
        bytes_accessed=(M * K + K * N + M * N) * itemsize,
    )
    cparams = pltpu.CompilerParams(
        dimension_semantics=("parallel", "parallel", "arbitrary"),
        vmem_limit_bytes=_vmem_limit_bytes(),
    )
    scratch = [pltpu.VMEM((tm, tn), jnp.float32)]
    out_shape = jax.ShapeDtypeStruct((M, N), x2d.dtype)

    if bias is None:
        return pl.pallas_call(
            _matmul_kernel,
            out_shape=out_shape,
            grid=grid,
            in_specs=[x_spec, w_spec],
            out_specs=o_spec,
            scratch_shapes=scratch,
            compiler_params=cparams,
            cost_estimate=cost,
        )(x2d, w)

    b_spec = pl.BlockSpec((1, tn), lambda i, j, k: (0, j))
    return pl.pallas_call(
        _matmul_bias_kernel,
        out_shape=out_shape,
        grid=grid,
        in_specs=[x_spec, w_spec, b_spec],
        out_specs=o_spec,
        scratch_shapes=scratch,
        compiler_params=cparams,
        cost_estimate=cost,
    )(x2d, w, bias.reshape(1, N))


# ----------------------------------------------------------------------------
# Fused q/k/v projection: x:(M,C) @ w_qkv:(C,3C) -> (3, M, C) slabs
# ----------------------------------------------------------------------------
def _qkv_matmul_kernel(x_ref, w_ref, o_ref, acc_ref, *, dim):
    @pl.when(pl.program_id(1) == 0)
    def _init():
        acc_ref[...] = jnp.zeros_like(acc_ref)

    acc_ref[...] += jnp.dot(x_ref[...], w_ref[...],
                            preferred_element_type=jnp.float32)

    @pl.when(pl.program_id(1) == pl.num_programs(1) - 1)
    def _finalize():
        # Split the (tm, 3C) accumulator into the q / k / v slabs with static
        # lane slices; each slab store is full-width (dim) and contiguous.
        for s in range(3):
            o_ref[s] = acc_ref[:, s * dim:(s + 1) * dim].astype(o_ref.dtype)


def fused_qkv_matmul(x2d, w_qkv, dim, *, tm_target=256, tk_target=512):
    """One pass over x for all three projections. Output shape (3, M, dim)."""
    M, K = x2d.shape
    K2, N3 = w_qkv.shape
    assert K == K2 and N3 == 3 * dim

    tm = _pick_tile(M, tm_target, _sublane_align(x2d.dtype))
    tk = _pick_tile(K, tk_target, 128)
    grid = (M // tm, K // tk)

    x_spec = pl.BlockSpec((tm, tk), lambda i, k: (i, k))
    w_spec = pl.BlockSpec((tk, N3), lambda i, k: (k, 0))       # full output width
    o_spec = pl.BlockSpec((3, tm, dim), lambda i, k: (0, i, 0))

    itemsize = x2d.dtype.itemsize
    cost = pl.CostEstimate(
        flops=2 * M * N3 * K,
        transcendentals=0,
        bytes_accessed=(M * K + K * N3 + M * N3) * itemsize,
    )
    return pl.pallas_call(
        functools.partial(_qkv_matmul_kernel, dim=dim),
        out_shape=jax.ShapeDtypeStruct((3, M, dim), x2d.dtype),
        grid=grid,
        in_specs=[x_spec, w_spec],
        out_specs=o_spec,
        scratch_shapes=[pltpu.VMEM((tm, N3), jnp.float32)],
        compiler_params=pltpu.CompilerParams(
            dimension_semantics=("parallel", "arbitrary"),
            vmem_limit_bytes=_vmem_limit_bytes(),
        ),
        cost_estimate=cost,
    )(x2d, w_qkv)


# ----------------------------------------------------------------------------
# Sparse (top-k masked softmax) attention kernel
# ----------------------------------------------------------------------------
def _sparse_attention_kernel(q_ref, k_ref, v_ref, o_ref, out_acc_ref, *,
                             num_heads, head_dim, scale, num_keep, n_keys,
                             n_bisect=40):
    # q_ref: (tq, C), k_ref / v_ref: (N, C), o_ref: (tq, C), C = H*D.
    # TODO(synk): for very long N (esp. v7x 64 MiB VMEM) restructure as a
    # two-pass flash-style kernel streaming K/V blocks instead of full-N
    # residency, and/or add a head-group grid axis when head_dim % 128 == 0.
    for h in range(num_heads):        # static unroll over heads
        lo = h * head_dim
        hi = lo + head_dim
        qh = q_ref[:, lo:hi] * scale  # (tq, D) -- keep input dtype on the MXU
        kh = k_ref[:, lo:hi]          # (N,  D)
        vh = v_ref[:, lo:hi]          # (N,  D)

        # scores: contract last dims directly (no k.T / XLU transpose)
        s = lax.dot_general(
            qh, kh, (((1,), (1,)), ((), ())),
            preferred_element_type=jnp.float32)                  # (tq, N) f32

        row_max = jnp.max(s, axis=-1, keepdims=True)             # (tq, 1)

        # ---- per-row top-k threshold via O(log) value bisection -----------
        # Invariant: count(s >= lo_b) >= num_keep. At convergence lo_b is the
        # num_keep-th largest score (ties at the threshold are all kept, same
        # as the >=-threshold reference).
        if num_keep <= 1:
            thresh = row_max
        elif num_keep >= n_keys:
            thresh = jnp.min(s, axis=-1, keepdims=True)
        else:
            row_min = jnp.min(s, axis=-1, keepdims=True)
            kf = jnp.float32(num_keep)

            def body(_, carry):
                lo_b, hi_b = carry
                mid = 0.5 * (lo_b + hi_b)
                cnt = jnp.sum(jnp.where(s >= mid, 1.0, 0.0),
                              axis=-1, keepdims=True)
                ok = cnt >= kf                       # mid keeps enough entries
                lo_b = jnp.where(ok, mid, lo_b)
                hi_b = jnp.where(ok, hi_b, mid)
                return lo_b, hi_b

            thresh, _ = lax.fori_loop(0, n_bisect, body, (row_min, row_max))

        # TODO(synk): ties exactly at the threshold keep all tied entries,
        # whereas torch.topk keeps exactly num_keep indices (identical for
        # distinct scores, the generic case).
        keep = s >= thresh                                       # (tq, N) bool

        p = jnp.exp(s - row_max)                                 # (tq, N)
        denom = jnp.sum(p, axis=-1, keepdims=True)   # softmax over ALL keys
        # PyTorch masks AFTER softmax without renormalizing.
        r = pl.reciprocal(denom, approx=True)        # EUP + one NR step
        r = r * (2.0 - denom * r)
        attn = jnp.where(keep, p, 0.0) * r

        oh = jnp.dot(attn.astype(vh.dtype), vh,
                     preferred_element_type=jnp.float32)          # (tq, D)
        out_acc_ref[:, lo:hi] = oh

    # Single lane-dense store of the whole (tq, C) output tile.
    o_ref[...] = out_acc_ref[...].astype(o_ref.dtype)


def pallas_sparse_attention(qkv, *, num_heads, scale, num_keep, tq_target=256):
    """qkv: (3, B, N, C) slabs [q, k, v] in (B, N, C) layout."""
    three, B, N, C = qkv.shape
    assert three == 3
    head_dim = C // num_heads
    tq = _pick_tile(N, tq_target, _sublane_align(qkv.dtype))
    grid = (B, N // tq)

    # Same qkv array passed three times; BlockSpecs window the q / k / v slabs
    # (leading dims squeezed so the kernel sees 2-D (rows, C) refs).
    q_spec = pl.BlockSpec((None, None, tq, C), lambda b, i: (0, b, i, 0))
    k_spec = pl.BlockSpec((None, None, N, C), lambda b, i: (1, b, 0, 0))
    v_spec = pl.BlockSpec((None, None, N, C), lambda b, i: (2, b, 0, 0))
    o_spec = pl.BlockSpec((None, tq, C), lambda b, i: (b, i, 0))

    itemsize = qkv.dtype.itemsize
    cost = pl.CostEstimate(
        flops=4 * B * num_heads * N * N * head_dim,
        transcendentals=B * num_heads * N * N,
        bytes_accessed=4 * B * N * C * itemsize,
    )
    kernel = functools.partial(
        _sparse_attention_kernel, num_heads=num_heads, head_dim=head_dim,
        scale=scale, num_keep=num_keep, n_keys=N)

    return pl.pallas_call(
        kernel,
        out_shape=jax.ShapeDtypeStruct((B, N, C), qkv.dtype),
        grid=grid,
        in_specs=[q_spec, k_spec, v_spec],
        out_specs=o_spec,
        scratch_shapes=[pltpu.VMEM((tq, C), jnp.float32)],
        compiler_params=pltpu.CompilerParams(
            dimension_semantics=("parallel", "parallel"),
            vmem_limit_bytes=_vmem_limit_bytes(),
        ),
        cost_estimate=cost,
    )(qkv, qkv, qkv)


# ----------------------------------------------------------------------------
# Full forward pass (mirrors SparseFinerAttention.forward, eval mode)
# ----------------------------------------------------------------------------
def sparse_finer_attention_forward(x, params, *, num_heads, sparsity):
    B, N, C = x.shape
    head_dim = C // num_heads
    scale = head_dim ** (-0.5)
    num_keep = max(1, int(N * sparsity))

    x2d = x.reshape(B * N, C)

    # Fused linear_q / linear_k / linear_v (bias=False): one pass over x.
    w_qkv = jnp.concatenate(
        [params["w_q"].T, params["w_k"].T, params["w_v"].T], axis=1)   # (C, 3C)
    qkv = fused_qkv_matmul(x2d, w_qkv, C).reshape(3, B, N, C)

    # Top-k-masked softmax attention, computed head-by-head inside the kernel
    # directly in (B, N, C) layout -- no (B, H, N, D) transposes in HBM.
    out = pallas_sparse_attention(qkv, num_heads=num_heads, scale=scale,
                                  num_keep=num_keep)

    # attn_drop / proj_drop are p=0.0 -> identity. proj: Linear(dim, dim)+bias.
    y = tiled_matmul(out.reshape(B * N, C), params["w_proj"].T,
                     bias=params["b_proj"])
    return y.reshape(B, N, C)


def reference_forward(x, params, *, num_heads, sparsity):
    B, N, C = x.shape
    D = C // num_heads
    scale = D ** (-0.5)
    num_keep = max(1, int(N * sparsity))

    def proj(w):
        return (x @ w.T).reshape(B, N, num_heads, D).transpose(0, 2, 1, 3)

    q, k, v = proj(params["w_q"]), proj(params["w_k"]), proj(params["w_v"])
    attn = jnp.einsum("bhnd,bhmd->bhnm", q, k) * scale
    attn = jax.nn.softmax(attn, axis=-1)
    topv, _ = lax.top_k(attn, num_keep)
    thresh = topv[..., -1:]
    attn = jnp.where(attn >= thresh, attn, 0.0)   # keep top-k values, zero rest
    out = jnp.einsum("bhnm,bhmd->bhnd", attn, v)
    out = out.transpose(0, 2, 1, 3).reshape(B, N, C)
    return out @ params["w_proj"].T + params["b_proj"]


if __name__ == "__main__":
    B, N, C = 2, 64, 64
    num_heads = 8
    sparsity = 0.1          # module default -> num_keep = max(1, int(6.4)) = 6

    key = jax.random.PRNGKey(0)
    kx, kq, kk, kv, kp, kb = jax.random.split(key, 6)

    x = jax.random.normal(kx, (B, N, C), dtype=jnp.float32)
    init = 1.0 / C ** 0.5
    params = {
        "w_q": jax.random.normal(kq, (C, C), dtype=jnp.float32) * init,
        "w_k": jax.random.normal(kk, (C, C), dtype=jnp.float32) * init,
        "w_v": jax.random.normal(kv, (C, C), dtype=jnp.float32) * init,
        "w_proj": jax.random.normal(kp, (C, C), dtype=jnp.float32) * init,
        "b_proj": jax.random.normal(kb, (C,), dtype=jnp.float32) * 0.01,
    }

    y = sparse_finer_attention_forward(x, params, num_heads=num_heads,
                                       sparsity=sparsity)
    jax.block_until_ready(y)

    y_ref = reference_forward(x, params, num_heads=num_heads, sparsity=sparsity)
    assert y.shape == (B, N, C)
    max_err = jnp.max(jnp.abs(y - y_ref))
    assert jnp.allclose(y, y_ref, atol=1e-3, rtol=1e-3), (
        f"mismatch vs reference: max abs err = {max_err}")

    print("KERNEL_OK")
</pallas_src>

<mosaic_0001>
module attributes {stable_mosaic.version = 11 : i64} {
  func.func @_qkv_matmul_kernel(%arg0: i32, %arg1: i32, %arg2: memref<128x64xf32, #tpu.memory_space<vmem>>, %arg3: memref<64x192xf32, #tpu.memory_space<vmem>>, %arg4: memref<3x128x64xf32, #tpu.memory_space<vmem>>, %arg5: memref<128x192xf32, #tpu.memory_space<vmem>>) attributes {dimension_semantics = [#tpu.dimension_semantics<parallel>, #tpu.dimension_semantics<arbitrary>], iteration_bounds = array<i64: 1, 1>, scalar_prefetch = 0 : i64, scratch_operands = 1 : i64, tpu.core_type = #tpu.core_type<tc>, window_params = [{transform_indices = @transform_0, window_bounds = array<i64: 128, 64>}, {transform_indices = @transform_1, window_bounds = array<i64: 64, 192>}, {transform_indices = @transform_2, window_bounds = array<i64: 3, 128, 64>}]} {
    %c0_i32 = arith.constant 0 : i32
    %0 = arith.cmpi eq, %arg1, %c0_i32 : i32
    %1 = arith.extui %0 : i1 to i32
    %c0_i32_0 = arith.constant 0 : i32
    %2 = arith.cmpi ne, %1, %c0_i32_0 : i32
    scf.if %2 {
      %cst_10 = arith.constant 0.000000e+00 : f32
      %12 = vector.broadcast %cst_10 : f32 to vector<128x192xf32>
      %c0_11 = arith.constant 0 : index
      %c0_12 = arith.constant 0 : index
      %13 = vector.load %arg5[%c0_11, %c0_12] : memref<128x192xf32, #tpu.memory_space<vmem>>, vector<128x192xf32>
      tpu.vector_store %arg5[%c0_11, %c0_12], %12 {strides = array<i32>} : memref<128x192xf32, #tpu.memory_space<vmem>>, vector<128x192xf32>,
    } else {
    }
    %c0 = arith.constant 0 : index
    %c0_1 = arith.constant 0 : index
    %3 = vector.load %arg5[%c0, %c0_1] : memref<128x192xf32, #tpu.memory_space<vmem>>, vector<128x192xf32>
    %c0_2 = arith.constant 0 : index
    %c0_3 = arith.constant 0 : index
    %4 = vector.load %arg2[%c0_2, %c0_3] : memref<128x64xf32, #tpu.memory_space<vmem>>, vector<128x64xf32>
    %c0_4 = arith.constant 0 : index
    %c0_5 = arith.constant 0 : index
    %5 = vector.load %arg3[%c0_4, %c0_5] : memref<64x192xf32, #tpu.memory_space<vmem>>, vector<64x192xf32>
    %cst = arith.constant dense<0.000000e+00> : vector<128x192xf32>
    %6 = tpu.matmul %4, %5, %cst {dimension_numbers = #tpu.dot_dimension_numbers<[1], [0], [0], [1], [0, 0, 1, 1], [], []>} : vector<128x64xf32>, vector<64x192xf32>, vector<128x192xf32> -> vector<128x192xf32>
    %7 = arith.addf %3, %6 : vector<128x192xf32>
    %c0_6 = arith.constant 0 : index
    %c0_7 = arith.constant 0 : index
    %8 = vector.load %arg5[%c0_6, %c0_7] : memref<128x192xf32, #tpu.memory_space<vmem>>, vector<128x192xf32>
    tpu.vector_store %arg5[%c0_6, %c0_7], %7 {strides = array<i32>} : memref<128x192xf32, #tpu.memory_space<vmem>>, vector<128x192xf32>,
    %c0_i32_8 = arith.constant 0 : i32
    %9 = arith.cmpi eq, %arg1, %c0_i32_8 : i32
    %10 = arith.extui %9 : i1 to i32
    %c0_i32_9 = arith.constant 0 : i32
    %11 = arith.cmpi ne, %10, %c0_i32_9 : i32
    scf.if %11 {
      %c0_10 = arith.constant 0 : index
      %c0_11 = arith.constant 0 : index
      %12 = vector.load %arg5[%c0_10, %c0_11] : memref<128x192xf32, #tpu.memory_space<vmem>>, vector<128x64xf32>
      %c0_12 = arith.constant 0 : index
      %c0_13 = arith.constant 0 : index
      %c0_14 = arith.constant 0 : index
      %13 = vector.load %arg4[%c0_12, %c0_13, %c0_14] : memref<3x128x64xf32, #tpu.memory_space<vmem>>, vector<1x128x64xf32>
      %14 = vector.shape_cast %13 : vector<1x128x64xf32> to vector<128x64xf32>
      %15 = vector.shape_cast %12 : vector<128x64xf32> to vector<1x128x64xf32>
      tpu.vector_store %arg4[%c0_12, %c0_13, %c0_14], %15 {strides = array<i32>} : memref<3x128x64xf32, #tpu.memory_space<vmem>>, vector<1x128x64xf32>,
      %c0_15 = arith.constant 0 : index
      %c64 = arith.constant 64 : index
      %16 = vector.load %arg5[%c0_15, %c64] : memref<128x192xf32, #tpu.memory_space<vmem>>, vector<128x64xf32>
      %c1 = arith.constant 1 : index
      %c0_16 = arith.constant 0 : index
      %c0_17 = arith.constant 0 : index
      %17 = vector.load %arg4[%c1, %c0_16, %c0_17] : memref<3x128x64xf32, #tpu.memory_space<vmem>>, vector<1x128x64xf32>
      %18 = vector.shape_cast %17 : vector<1x128x64xf32> to vector<128x64xf32>
      %19 = vector.shape_cast %16 : vector<128x64xf32> to vector<1x128x64xf32>
      tpu.vector_store %arg4[%c1, %c0_16, %c0_17], %19 {strides = array<i32>} : memref<3x128x64xf32, #tpu.memory_space<vmem>>, vector<1x128x64xf32>,
      %c0_18 = arith.constant 0 : index
      %c128 = arith.constant 128 : index
      %20 = vector.load %arg5[%c0_18, %c128] : memref<128x192xf32, #tpu.memory_space<vmem>>, vector<128x64xf32>
      %c2 = arith.constant 2 : index
      %c0_19 = arith.constant 0 : index
      %c0_20 = arith.constant 0 : index
      %21 = vector.load %arg4[%c2, %c0_19, %c0_20] : memref<3x128x64xf32, #tpu.memory_space<vmem>>, vector<1x128x64xf32>
      %22 = vector.shape_cast %21 : vector<1x128x64xf32> to vector<128x64xf32>
      %23 = vector.shape_cast %20 : vector<128x64xf32> to vector<1x128x64xf32>
      tpu.vector_store %arg4[%c2, %c0_19, %c0_20], %23 {strides = array<i32>} : memref<3x128x64xf32, #tpu.memory_space<vmem>>, vector<1x128x64xf32>,
    } else {
    }
    return
  }
  func.func @transform_0(%arg0: i32, %arg1: i32) -> (i32, i32) {
    %c0_i32 = arith.constant 0 : i32
    return %arg0, %arg1 : i32, i32
  }
  func.func @transform_1(%arg0: i32, %arg1: i32) -> (i32, i32) {
    %c0_i32 = arith.constant 0 : i32
    %c0_i32_0 = arith.constant 0 : i32
    return %arg1, %c0_i32 : i32, i32
  }
  func.func @transform_2(%arg0: i32, %arg1: i32) -> (i32, i32, i32) {
    %c0_i32 = arith.constant 0 : i32
    %c0_i32_0 = arith.constant 0 : i32
    %c0_i32_1 = arith.constant 0 : i32
    return %c0_i32, %arg0, %c0_i32_0 : i32, i32, i32
  }
}

</mosaic_0001>

<bundles_post_ra>
// kernel: tpu_custom_call.1
= control target key start
LH: loop header
LB: loop body
LE: loop exit
PB: predicated region body
PF: predicated region fallthrough
CT: control target
= control target key end

     0   :  { %vm16_vm0 = vcmask 523264   ;;  %v629_v3 = vmov 0.0   ;;  %s630_s18 = smov 64   ;;  %s1030_s1 = inlined_call_operand.vmem [shape: f32[64,192], index: 1, kind: input, shape index: {}]   ;;  %s1031_s0 = inlined_call_operand.vmem [shape: f32[128,64], index: 0, kind: input, shape index: {}]   ;;  %s1032_s2 = inlined_call_operand.vmem [shape: f32[3,128,64], index: 2, kind: output, shape index: {}]  }
   0x1   :  { %v97_v0 = vld [vmem:[%s1030_s1 + $0x8] sm:$0xff]  ;;  %v99_v1 = vld [vmem:[%s1030_s1 + $0x18] sm:$0xff]  ;;  %v96_v2 = vld [vmem:[%s1030_s1] sm:$0xff]  ;;  %225 = vmatprep.mubr.f32.mxu0 %v629_v3  ;;  %273 = vmatprep.mubr.f32.mxu1 %v629_v3  ;;  %17 = vst.msk [vmem:[#allocation2 + $0x8] sm:$0xff] %vm16_vm0, %v629_v3 }
   0x2   :  { %19 = vst.msk [vmem:[#allocation2 + $0x18] sm:$0xff] %vm16_vm0, %v629_v3  ;;  %21 = vst.msk [vmem:[#allocation2 + $0x28] sm:$0xff] %vm16_vm0, %v629_v3  ;;  %v603_v4 = vpack.c.bf16 %v99_v1, %v97_v0  ;;  %v98_v5 = vld [vmem:[%s1030_s1 + $0x10] sm:$0xff]  ;;  %v101_v6 = vld [vmem:[%s1030_s1 + $0x28] sm:$0xff] }
   0x3   :  { %23 = vst.msk [vmem:[#allocation2 + $0x38] sm:$0xff] %vm16_vm0, %v629_v3  ;;  %25 = vst.msk [vmem:[#allocation2 + $0x48] sm:$0xff] %vm16_vm0, %v629_v3  ;;  %v103_v7 = vld [vmem:[%s1030_s1 + $0x38] sm:$0xff]  ;;  %v605_v8 = vpack.c.bf16 %v98_v5, %v96_v2  ;;  %v100_v10 = vld [vmem:[%s1030_s1 + $0x20] sm:$0xff] }
   0x4   :  { %27 = vst.msk [vmem:[#allocation2 + $0x58] sm:$0xff] %vm16_vm0, %v629_v3  ;;  %29 = vst.msk [vmem:[#allocation2 + $0x68] sm:$0xff] %vm16_vm0, %v629_v3  ;;  %v607_v9 = vpack.c.bf16 %v103_v7, %v101_v6  ;;  %v102_v11 = vld [vmem:[%s1030_s1 + $0x30] sm:$0xff]  ;;  %v105_v12 = vld [vmem:[%s1030_s1 + $0x48] sm:$0xff]  ;;  %604 = vmatprep.subr.bf16.mxu0 %v603_v4  ;;  %619 = vmatprep.subr.bf16.mxu1 %v603_v4 }
   0x5   :  { %31 = vst.msk [vmem:[#allocation2 + $0x78] sm:$0xff] %vm16_vm0, %v629_v3  ;;  %33 = vst.msk [vmem:[#allocation2 + $0x88] sm:$0xff] %vm16_vm0, %v629_v3  ;;  %v107_v13 = vld [vmem:[%s1030_s1 + $0x58] sm:$0xff]  ;;  %606 = vmatpush1.bf16.msra.mxu0 %v605_v8  ;;  %623 = vmatpush1.bf16.msra.mxu1 %v605_v8  ;;  %v609_v14 = vpack.c.bf16 %v102_v11, %v100_v10  ;;  %v104_v16 = vld [vmem:[%s1030_s1 + $0x40] sm:$0xff] }
   0x6   :  { %35 = vst.msk [vmem:[#allocation2 + $0x98] sm:$0xff] %vm16_vm0, %v629_v3  ;;  %37 = vst.msk [vmem:[#allocation2 + $0xa8] sm:$0xff] %vm16_vm0, %v629_v3  ;;  %608 = vmatprep.subr.bf16.mxu0 %v607_v9  ;;  %620 = vmatprep.subr.bf16.mxu1 %v607_v9  ;;  %v611_v15 = vpack.c.bf16 %v107_v13, %v105_v12  ;;  %v106_v17 = vld [vmem:[%s1030_s1 + $0x50] sm:$0xff]  ;;  %v109_v18 = vld [vmem:[%s1030_s1 + $0x68] sm:$0xff] }
   0x7   :  { %39 = vst.msk [vmem:[#allocation2 + $0xb8] sm:$0xff] %vm16_vm0, %v629_v3  ;;  %41 = vst.msk [vmem:[#allocation2 + $0xc8] sm:$0xff] %vm16_vm0, %v629_v3  ;;  %v111_v19 = vld [vmem:[%s1030_s1 + $0x78] sm:$0xff]  ;;  %v613_v20 = vpack.c.bf16 %v106_v17, %v104_v16  ;;  %v108_v22 = vld [vmem:[%s1030_s1 + $0x60] sm:$0xff] }
   0x8   :  { %43 = vst.msk [vmem:[#allocation2 + $0xd8] sm:$0xff] %vm16_vm0, %v629_v3  ;;  %45 = vst.msk [vmem:[#allocation2 + $0xe8] sm:$0xff] %vm16_vm0, %v629_v3  ;;  %v615_v21 = vpack.c.bf16 %v111_v19, %v109_v18  ;;  %v110_v23 = vld [vmem:[%s1030_s1 + $0x70] sm:$0xff]  ;;  %v80_v25 = vld [vmem:[%s1031_s0] sm:$0xff] }
   0x9   :  { %47 = vst.msk [vmem:[#allocation2 + $0xf8] sm:$0xff] %vm16_vm0, %v629_v3  ;;  %610 = vmatpush1.bf16.msra.mxu0 %v609_v14  ;;  %624 = vmatpush1.bf16.msra.mxu1 %v609_v14  ;;  %v617_v24 = vpack.c.bf16 %v110_v23, %v108_v22  ;;  %v88_v26 = vld [vmem:[%s1031_s0 + $0x40] sm:$0xff]  ;;  %v81_v27 = vld [vmem:[%s1031_s0 + $0x8] sm:$0xff]  ;;  %v82_v29 = vld [vmem:[%s1031_s0 + $0x10] sm:$0xff] }
   0xa   :  { %612 = vmatprep.subr.bf16.mxu0 %v611_v15  ;;  %621 = vmatprep.subr.bf16.mxu1 %v611_v15  ;;  %v89_v28 = vld [vmem:[%s1031_s0 + $0x48] sm:$0xff]  ;;  %v90_v30 = vld [vmem:[%s1031_s0 + $0x50] sm:$0xff]  ;;  %v83_v31 = vld [vmem:[%s1031_s0 + $0x18] sm:$0xff] }
   0xb   :  { %v91_v32 = vld [vmem:[%s1031_s0 + $0x58] sm:$0xff]  ;;  %v84_v33 = vld [vmem:[%s1031_s0 + $0x20] sm:$0xff]  ;;  %v85_v35 = vld [vmem:[%s1031_s0 + $0x28] sm:$0xff] }
   0xc   :  { %v92_v34 = vld [vmem:[%s1031_s0 + $0x60] sm:$0xff]  ;;  %v93_v36 = vld [vmem:[%s1031_s0 + $0x68] sm:$0xff]  ;;  %v86_v37 = vld [vmem:[%s1031_s0 + $0x30] sm:$0xff] }
   0xd   :  { %614 = vmatpush1.bf16.msra.mxu0 %v613_v20  ;;  %625 = vmatpush1.bf16.msra.mxu1 %v613_v20  ;;  %v94_v38 = vld [vmem:[%s1031_s0 + $0x70] sm:$0xff]  ;;  %v87_v39 = vld [vmem:[%s1031_s0 + $0x38] sm:$0xff]  ;;  %v49_v41 = vld [vmem:[#allocation2 + $0x8] sm:$0xff] }
   0xe   :  { %616 = vmatprep.subr.bf16.mxu0 %v615_v21  ;;  %622 = vmatprep.subr.bf16.mxu1 %v615_v21  ;;  %v95_v40 = vld [vmem:[%s1031_s0 + $0x78] sm:$0xff]  ;;  %v65_v42 = vld [vmem:[#allocation2 + $0x88] sm:$0xff] }
   0xf   :  { %v51_v49 = vld [vmem:[#allocation2 + $0x18] sm:$0xff]  ;;  %v53_v57 = vld [vmem:[#allocation2 + $0x28] sm:$0xff] }
  0x10   :  { %v67_v50 = vld [vmem:[#allocation2 + $0x98] sm:$0xff]  ;;  %v69_v58 = vld [vmem:[#allocation2 + $0xa8] sm:$0xff] }
  0x11   :  { %618 = vmatpush1.bf16.msra.mxu0 %v617_v24  ;;  %626 = vmatpush1.bf16.msra.mxu1 %v617_v24  ;;  %v55_v1 = vld [vmem:[#allocation2 + $0x38] sm:$0xff]  ;;  %v57_v11 = vld [vmem:[#allocation2 + $0x48] sm:$0xff] }
  0x12   :  { %v71_v4 = vld [vmem:[#allocation2 + $0xb8] sm:$0xff]  ;;  %v73_v14 = vld [vmem:[#allocation2 + $0xc8] sm:$0xff] }
  0x13   :  { %v59_v21 = vld [vmem:[#allocation2 + $0x58] sm:$0xff] }
  0x14   :  { %555 = vmatmul.mubr.msk.f32.vlgmr.msra.gmra.mrb[0].mxu0 %vm16_vm0, %v80_v25  ;;  %563 = vmatmul.mubr.msk.f32.vlgmr.msra.gmra.mrb[0].mxu1 %vm16_vm0, %v88_v26  ;;  %v75_v24 = vld [vmem:[#allocation2 + $0xd8] sm:$0xff] }
  0x15   :  { %231 = vmatprep.mubr.f32.mxu0 %v629_v3  ;;  %279 = vmatprep.mubr.f32.mxu1 %v629_v3 }
  0x18   :  { %556 = vmatmul.mubr.msk.f32.gmra.mrb[2].mxu0 %vm16_vm0, %v81_v27  ;;  %564 = vmatmul.mubr.msk.f32.gmra.mrb[2].mxu1 %vm16_vm0, %v89_v28 }
  0x19   :  { %237 = vmatprep.mubr.f32.mxu0 %v629_v3  ;;  %285 = vmatprep.mubr.f32.mxu1 %v629_v3 }
  0x1c   :  { %557 = vmatmul.mubr.msk.f32.gmra.mrb[4].mxu0 %vm16_vm0, %v82_v29  ;;  %565 = vmatmul.mubr.msk.f32.gmra.mrb[4].mxu1 %vm16_vm0, %v90_v30 }
  0x1d   :  { %243 = vmatprep.mubr.f32.mxu0 %v629_v3  ;;  %291 = vmatprep.mubr.f32.mxu1 %v629_v3 }
  0x20   :  { %558 = vmatmul.mubr.msk.f32.gmra.mrb[6].mxu0 %vm16_vm0, %v83_v31  ;;  %566 = vmatmul.mubr.msk.f32.gmra.mrb[6].mxu1 %vm16_vm0, %v91_v32  ;;  %v61_v31 = vld [vmem:[#allocation2 + $0x68] sm:$0xff] }
  0x21   :  { %249 = vmatprep.mubr.f32.mxu0 %v629_v3  ;;  %297 = vmatprep.mubr.f32.mxu1 %v629_v3 }
  0x24   :  { %559 = vmatmul.mubr.msk.f32.gmra.mrb[8].mxu0 %vm16_vm0, %v84_v33  ;;  %567 = vmatmul.mubr.msk.f32.gmra.mrb[8].mxu1 %vm16_vm0, %v92_v34  ;;  %v77_v34 = vld [vmem:[#allocation2 + $0xe8] sm:$0xff] }
  0x25   :  { %255 = vmatprep.mubr.f32.mxu0 %v629_v3  ;;  %303 = vmatprep.mubr.f32.mxu1 %v629_v3 }
  0x28   :  { %560 = vmatmul.mubr.msk.f32.gmra.mrb[10].mxu0 %vm16_vm0, %v85_v35  ;;  %568 = vmatmul.mubr.msk.f32.gmra.mrb[10].mxu1 %vm16_vm0, %v93_v36 }
  0x29   :  { %261 = vmatprep.mubr.f32.mxu0 %v629_v3  ;;  %309 = vmatprep.mubr.f32.mxu1 %v629_v3 }
  0x2c   :  { %561 = vmatmul.mubr.msk.f32.gmra.mrb[12].mxu0 %vm16_vm0, %v86_v37  ;;  %569 = vmatmul.mubr.msk.f32.gmra.mrb[12].mxu1 %vm16_vm0, %v94_v38 }
  0x2d   :  { %267 = vmatprep.mubr.f32.mxu0 %v629_v3  ;;  %315 = vmatprep.mubr.f32.mxu1 %v629_v3 }
  0x30   :  { %562 = vmatmul.mubr.msk.f32.gmra.mrb[14].mxu0 %vm16_vm0, %v87_v39  ;;  %570 = vmatmul.mubr.msk.f32.gmra.mrb[14].mxu1 %vm16_vm0, %v95_v40 }
  0xe7   :  { %v227_v43 = vpop.f32.mrb[0].mxu0  ;;  %v275_v44 = vpop.f32.mrb[0].mxu1 }
  0xe8   :  { %v229_v45 = vpop.f32.mrb[1].mxu0  ;;  %v277_v46 = vpop.f32.mrb[1].mxu1  ;;  %405 = vst.msk [vmem:[%s1032_s2] sm:$0xff] %vm16_vm0, %v227_v43  ;;  %413 = vst.msk [vmem:[%s1032_s2 + $0x40] sm:$0xff] %vm16_vm0, %v275_v44  ;;  %453 = vrot.lane.b32.xlu0 %v227_v43, %s630_s18 }
  0xe9   :  { %v323_v47 = vadd.f32 %v229_v45, %v49_v41  ;;  %v339_v48 = vadd.f32 %v277_v46, %v65_v42  ;;  %v63_v41 = vld [vmem:[#allocation2 + $0x78] sm:$0xff] }
  0xeb   :  { %355 = vst.msk [vmem:[#allocation2 + $0x8] sm:$0xff] %vm16_vm0, %v323_v47  ;;  %371 = vst.msk [vmem:[#allocation2 + $0x88] sm:$0xff] %vm16_vm0, %v339_v48  ;;  %v233_v51 = vpop.f32.mrb[2].mxu0  ;;  %v281_v52 = vpop.f32.mrb[2].mxu1 }
  0xec   :  { %v235_v53 = vpop.f32.mrb[3].mxu0  ;;  %v283_v54 = vpop.f32.mrb[3].mxu1  ;;  %406 = vst.msk [vmem:[%s1032_s2 + $0x8] sm:$0xff] %vm16_vm0, %v233_v51  ;;  %414 = vst.msk [vmem:[%s1032_s2 + $0x48] sm:$0xff] %vm16_vm0, %v281_v52  ;;  %471 = vrot.lane.b32.xlu1 %v281_v52, %s630_s18  ;;  %469 = vrot.lane.b32.xlu0 %v275_v44, %s630_s18  ;;  %v79_v44 = vld [vmem:[#allocation2 + $0xf8] sm:$0xff] }
  0xed   :  { %v325_v55 = vadd.f32 %v235_v53, %v51_v49  ;;  %v341_v56 = vadd.f32 %v283_v54, %v67_v50 }
  0xef   :  { %357 = vst.msk [vmem:[#allocation2 + $0x18] sm:$0xff] %vm16_vm0, %v325_v55  ;;  %373 = vst.msk [vmem:[#allocation2 + $0x98] sm:$0xff] %vm16_vm0, %v341_v56  ;;  %v239_v59 = vpop.f32.mrb[4].mxu0  ;;  %v287_v60 = vpop.f32.mrb[4].mxu1 }
  0xf0   :  { %v241_v61 = vpop.f32.mrb[5].mxu0  ;;  %v289_v62 = vpop.f32.mrb[5].mxu1  ;;  %407 = vst.msk [vmem:[%s1032_s2 + $0x10] sm:$0xff] %vm16_vm0, %v239_v59  ;;  %415 = vst.msk [vmem:[%s1032_s2 + $0x50] sm:$0xff] %vm16_vm0, %v287_v60  ;;  %455 = vrot.lane.b32.xlu0 %v233_v51, %s630_s18  ;;  %457 = vrot.lane.b32.xlu1 %v239_v59, %s630_s18 }
  0xf1   :  { %v327_v63 = vadd.f32 %v241_v61, %v53_v57  ;;  %v343_v0 = vadd.f32 %v289_v62, %v69_v58 }
  0xf2   :  { %v518_v2 = vld [vmem:[#allocation2 + $0x8] sm:$0xff] }
  0xf3   :  { %v526_v3 = vld [vmem:[#allocation2 + $0x88] sm:$0xff]  ;;  %587 = vst.msk [vmem:[%s1032_s2 + $0x100] sm:$0xff] %vm16_vm0, %v518_v2  ;;  %359 = vst.msk [vmem:[#allocation2 + $0x28] sm:$0xff] %vm16_vm0, %v327_v63  ;;  %v245_v5 = vpop.f32.mrb[6].mxu0  ;;  %v293_v6 = vpop.f32.mrb[6].mxu1 }
  0xf4   :  { %595 = vst.msk [vmem:[%s1032_s2 + $0x140] sm:$0xff] %vm16_vm0, %v526_v3  ;;  %375 = vst.msk [vmem:[#allocation2 + $0xa8] sm:$0xff] %vm16_vm0, %v343_v0  ;;  %v247_v7 = vpop.f32.mrb[7].mxu0  ;;  %v295_v8 = vpop.f32.mrb[7].mxu1  ;;  %473 = vrot.lane.b32.xlu0 %v287_v60, %s630_s18  ;;  %459 = vrot.lane.b32.xlu1 %v245_v5, %s630_s18 }
  0xf5   :  { %v329_v9 = vadd.f32 %v247_v7, %v55_v1  ;;  %v345_v10 = vadd.f32 %v295_v8, %v71_v4  ;;  %408 = vst.msk [vmem:[%s1032_s2 + $0x18] sm:$0xff] %vm16_vm0, %v245_v5  ;;  %416 = vst.msk [vmem:[%s1032_s2 + $0x58] sm:$0xff] %vm16_vm0, %v293_v6 }
  0xf6   :  { %v519_v12 = vld [vmem:[#allocation2 + $0x18] sm:$0xff] }
  0xf7   :  { %v527_v13 = vld [vmem:[#allocation2 + $0x98] sm:$0xff]  ;;  %588 = vst.msk [vmem:[%s1032_s2 + $0x108] sm:$0xff] %vm16_vm0, %v519_v12  ;;  %361 = vst.msk [vmem:[#allocation2 + $0x38] sm:$0xff] %vm16_vm0, %v329_v9  ;;  %v251_v15 = vpop.f32.mrb[8].mxu0  ;;  %v299_v16 = vpop.f32.mrb[8].mxu1 }
  0xf8   :  { %596 = vst.msk [vmem:[%s1032_s2 + $0x148] sm:$0xff] %vm16_vm0, %v527_v13  ;;  %377 = vst.msk [vmem:[#allocation2 + $0xb8] sm:$0xff] %vm16_vm0, %v345_v10  ;;  %v253_v17 = vpop.f32.mrb[9].mxu0  ;;  %v301_v18 = vpop.f32.mrb[9].mxu1  ;;  %475 = vrot.lane.b32.xlu1 %v293_v6, %s630_s18  ;;  %461 = vrot.lane.b32.xlu0 %v251_v15, %s630_s18 }
  0xf9   :  { %v331_v19 = vadd.f32 %v253_v17, %v57_v11  ;;  %v347_v20 = vadd.f32 %v301_v18, %v73_v14  ;;  %409 = vst.msk [vmem:[%s1032_s2 + $0x20] sm:$0xff] %vm16_vm0, %v251_v15  ;;  %417 = vst.msk [vmem:[%s1032_s2 + $0x60] sm:$0xff] %vm16_vm0, %v299_v16 }
  0xfa   :  { %v520_v22 = vld [vmem:[#allocation2 + $0x28] sm:$0xff] }
  0xfb   :  { %v528_v23 = vld [vmem:[#allocation2 + $0xa8] sm:$0xff]  ;;  %589 = vst.msk [vmem:[%s1032_s2 + $0x110] sm:$0xff] %vm16_vm0, %v520_v22  ;;  %363 = vst.msk [vmem:[#allocation2 + $0x48] sm:$0xff] %vm16_vm0, %v331_v19  ;;  %v257_v25 = vpop.f32.mrb[10].mxu0  ;;  %v305_v26 = vpop.f32.mrb[10].mxu1 }
  0xfc   :  { %597 = vst.msk [vmem:[%s1032_s2 + $0x150] sm:$0xff] %vm16_vm0, %v528_v23  ;;  %379 = vst.msk [vmem:[#allocation2 + $0xc8] sm:$0xff] %vm16_vm0, %v347_v20  ;;  %v259_v27 = vpop.f32.mrb[11].mxu0  ;;  %v307_v28 = vpop.f32.mrb[11].mxu1  ;;  %477 = vrot.lane.b32.xlu0 %v299_v16, %s630_s18  ;;  %463 = vrot.lane.b32.xlu1 %v257_v25, %s630_s18 }
  0xfd   :  { %v333_v29 = vadd.f32 %v259_v27, %v59_v21  ;;  %v349_v30 = vadd.f32 %v307_v28, %v75_v24  ;;  %410 = vst.msk [vmem:[%s1032_s2 + $0x28] sm:$0xff] %vm16_vm0, %v257_v25  ;;  %418 = vst.msk [vmem:[%s1032_s2 + $0x68] sm:$0xff] %vm16_vm0, %v305_v26 }
  0xfe   :  { %v521_v32 = vld [vmem:[#allocation2 + $0x38] sm:$0xff] }
  0xff   :  { %v529_v33 = vld [vmem:[#allocation2 + $0xb8] sm:$0xff]  ;;  %590 = vst.msk [vmem:[%s1032_s2 + $0x118] sm:$0xff] %vm16_vm0, %v521_v32  ;;  %365 = vst.msk [vmem:[#allocation2 + $0x58] sm:$0xff] %vm16_vm0, %v333_v29  ;;  %v263_v35 = vpop.f32.mrb[12].mxu0  ;;  %v311_v36 = vpop.f32.mrb[12].mxu1 }
 0x100   :  { %598 = vst.msk [vmem:[%s1032_s2 + $0x158] sm:$0xff] %vm16_vm0, %v529_v33  ;;  %381 = vst.msk [vmem:[#allocation2 + $0xd8] sm:$0xff] %vm16_vm0, %v349_v30  ;;  %v265_v37 = vpop.f32.mrb[13].mxu0  ;;  %v313_v38 = vpop.f32.mrb[13].mxu1  ;;  %479 = vrot.lane.b32.xlu1 %v305_v26, %s630_s18  ;;  %465 = vrot.lane.b32.xlu0 %v263_v35, %s630_s18 }
 0x101   :  { %v335_v39 = vadd.f32 %v265_v37, %v61_v31  ;;  %v351_v40 = vadd.f32 %v313_v38, %v77_v34  ;;  %411 = vst.msk [vmem:[%s1032_s2 + $0x30] sm:$0xff] %vm16_vm0, %v263_v35  ;;  %419 = vst.msk [vmem:[%s1032_s2 + $0x70] sm:$0xff] %vm16_vm0, %v311_v36 }
 0x102   :  { %v522_v42 = vld [vmem:[#allocation2 + $0x48] sm:$0xff] }
 0x103   :  { %v530_v43 = vld [vmem:[#allocation2 + $0xc8] sm:$0xff]  ;;  %591 = vst.msk [vmem:[%s1032_s2 + $0x120] sm:$0xff] %vm16_vm0, %v522_v42  ;;  %367 = vst.msk [vmem:[#allocation2 + $0x68] sm:$0xff] %vm16_vm0, %v335_v39  ;;  %v269_v45 = vpop.f32.mrb[14].mxu0  ;;  %v317_v46 = vpop.f32.mrb[14].mxu1 }
 0x104   :  { %599 = vst.msk [vmem:[%s1032_s2 + $0x160] sm:$0xff] %vm16_vm0, %v530_v43  ;;  %383 = vst.msk [vmem:[#allocation2 + $0xe8] sm:$0xff] %vm16_vm0, %v351_v40  ;;  %v271_v47 = vpop.f32.mrb[15].mxu0  ;;  %v319_v48 = vpop.f32.mrb[15].mxu1  ;;  %481 = vrot.lane.b32.xlu0 %v311_v36, %s630_s18  ;;  %467 = vrot.lane.b32.xlu1 %v269_v45, %s630_s18 }
 0x105   :  { %v337_v49 = vadd.f32 %v271_v47, %v63_v41  ;;  %v353_v50 = vadd.f32 %v319_v48, %v79_v44  ;;  %412 = vst.msk [vmem:[%s1032_s2 + $0x38] sm:$0xff] %vm16_vm0, %v269_v45  ;;  %420 = vst.msk [vmem:[%s1032_s2 + $0x78] sm:$0xff] %vm16_vm0, %v317_v46 }
 0x106   :  { %v523_v51 = vld [vmem:[#allocation2 + $0x58] sm:$0xff] }
 0x107   :  { %v531_v52 = vld [vmem:[#allocation2 + $0xd8] sm:$0xff]  ;;  %592 = vst.msk [vmem:[%s1032_s2 + $0x128] sm:$0xff] %vm16_vm0, %v523_v51  ;;  %369 = vst.msk [vmem:[#allocation2 + $0x78] sm:$0xff] %vm16_vm0, %v337_v49 }
 0x108   :  { %600 = vst.msk [vmem:[%s1032_s2 + $0x168] sm:$0xff] %vm16_vm0, %v531_v52  ;;  %385 = vst.msk [vmem:[#allocation2 + $0xf8] sm:$0xff] %vm16_vm0, %v353_v50  ;;  %483 = vrot.lane.b32.xlu1 %v317_v46, %s630_s18 }
 0x10a   :  { %v524_v53 = vld [vmem:[#allocation2 + $0x68] sm:$0xff] }
 0x10b   :  { %v532_v54 = vld [vmem:[#allocation2 + $0xe8] sm:$0xff]  ;;  %593 = vst.msk [vmem:[%s1032_s2 + $0x130] sm:$0xff] %vm16_vm0, %v524_v53 }
 0x10c   :  { %601 = vst.msk [vmem:[%s1032_s2 + $0x170] sm:$0xff] %vm16_vm0, %v532_v54 }
 0x10e   :  { %v525_v55 = vld [vmem:[#allocation2 + $0x78] sm:$0xff] }
 0x10f   :  { %v533_v56 = vld [vmem:[#allocation2 + $0xf8] sm:$0xff]  ;;  %594 = vst.msk [vmem:[%s1032_s2 + $0x138] sm:$0xff] %vm16_vm0, %v525_v55 }
 0x110   :  { %602 = vst.msk [vmem:[%s1032_s2 + $0x178] sm:$0xff] %vm16_vm0, %v533_v56 }
 0x15a   :  { %v454_v57 = vpop.permute.xlu0 %453 }
 0x15b   :  { %571 = vst.msk [vmem:[%s1032_s2 + $0x80] sm:$0xff] %vm16_vm0, %v454_v57 }
 0x15e   :  { %v472_v58 = vpop.permute.xlu1 %471  ;;  %v470_v59 = vpop.permute.xlu0 %469 }
 0x15f   :  { %580 = vst.msk [vmem:[%s1032_s2 + $0xc8] sm:$0xff] %vm16_vm0, %v472_v58  ;;  %579 = vst.msk [vmem:[%s1032_s2 + $0xc0] sm:$0xff] %vm16_vm0, %v470_v59 }
 0x162   :  { %v456_v60 = vpop.permute.xlu0 %455  ;;  %v458_v61 = vpop.permute.xlu1 %457 }
 0x163   :  { %572 = vst.msk [vmem:[%s1032_s2 + $0x88] sm:$0xff] %vm16_vm0, %v456_v60  ;;  %573 = vst.msk [vmem:[%s1032_s2 + $0x90] sm:$0xff] %vm16_vm0, %v458_v61 }
 0x166   :  { %v474_v62 = vpop.permute.xlu0 %473  ;;  %v460_v63 = vpop.permute.xlu1 %459 }
 0x167   :  { %581 = vst.msk [vmem:[%s1032_s2 + $0xd0] sm:$0xff] %vm16_vm0, %v474_v62  ;;  %574 = vst.msk [vmem:[%s1032_s2 + $0x98] sm:$0xff] %vm16_vm0, %v460_v63 }
 0x16a   :  { %v476_v0 = vpop.permute.xlu1 %475  ;;  %v462_v1 = vpop.permute.xlu0 %461 }
 0x16b   :  { %582 = vst.msk [vmem:[%s1032_s2 + $0xd8] sm:$0xff] %vm16_vm0, %v476_v0  ;;  %575 = vst.msk [vmem:[%s1032_s2 + $0xa0] sm:$0xff] %vm16_vm0, %v462_v1 }
 0x16e   :  { %v478_v2 = vpop.permute.xlu0 %477  ;;  %v464_v3 = vpop.permute.xlu1 %463 }
 0x16f   :  { %583 = vst.msk [vmem:[%s1032_s2 + $0xe0] sm:$0xff] %vm16_vm0, %v478_v2  ;;  %576 = vst.msk [vmem:[%s1032_s2 + $0xa8] sm:$0xff] %vm16_vm0, %v464_v3 }
 0x172   :  { %v480_v4 = vpop.permute.xlu1 %479  ;;  %v466_v5 = vpop.permute.xlu0 %465 }
 0x173   :  { %584 = vst.msk [vmem:[%s1032_s2 + $0xe8] sm:$0xff] %vm16_vm0, %v480_v4  ;;  %577 = vst.msk [vmem:[%s1032_s2 + $0xb0] sm:$0xff] %vm16_vm0, %v466_v5 }
 0x176   :  { %v482_v6 = vpop.permute.xlu0 %481  ;;  %v468_v7 = vpop.permute.xlu1 %467 }
 0x177   :  { %585 = vst.msk [vmem:[%s1032_s2 + $0xf0] sm:$0xff] %vm16_vm0, %v482_v6  ;;  %578 = vst.msk [vmem:[%s1032_s2 + $0xb8] sm:$0xff] %vm16_vm0, %v468_v7 }
 0x17a   :  { %v484_v8 = vpop.permute.xlu1 %483 }
 0x17b   :  { %586 = vst.msk [vmem:[%s1032_s2 + $0xf8] sm:$0xff] %vm16_vm0, %v484_v8 }

</bundles_post_ra>
